<compile_context>
chip_gen: v6e
topology: v6e:2x2x1
jax: 0.10.0
libtpu: 0.0.40
codegen_flags: <defaults>
</compile_context>

<pallas_src>
import jax
import jax.numpy as jnp
from jax.experimental import pallas as pl
from jax.experimental.pallas import tpu as pltpu

_MiB = 1024 * 1024


def _wa_kernel(w_ref, x_ref, o_ref):
    # w_ref: (1,) f32 scalar-prefetch ref (SMEM).
    # x_ref / o_ref: (tile_rows, lanes) tiles in VMEM, carried in the I/O dtype.
    w = w_ref[0]                                   # scalar path
    # Keep the f32 upcast: v5e VPU/EUP have no bf16, and f32 keeps logsigmoid
    # accurate on v6e/v7x. This kernel is HBM/EUP bound, so the cast is free.
    x = x_ref[...].astype(jnp.float32)
    out1 = jnp.sin(x)
    # Numerically stable logsigmoid: min(x, 0) - log1p(exp(-|x|))
    out2 = jnp.minimum(x, 0.0) - jnp.log1p(jnp.exp(-jnp.abs(x)))
    # FMA-form blend: w*out1 + (1-w)*out2 == out2 + w*(out1 - out2)
    o_ref[...] = (out2 + w * (out1 - out2)).astype(o_ref.dtype)


def wa_forward(x, weight):
    """x: any-shape array (e.g. NCHW). weight: scalar parameter of shape (1,)."""
    orig_shape = x.shape
    dtype = x.dtype
    n = x.size
    itemsize = jnp.dtype(dtype).itemsize

    # Pick the widest lane count (multiple of 128) dividing n so the flatten /
    # reshape is a pure metadata change (no extra HBM pass).
    lanes = None
    for cand in (1024, 512, 256, 128):
        if n % cand == 0:
            lanes = cand
            break
    if lanes is None:
        # TODO(synk): non-128-divisible sizes fall back to pad + slice, which adds
        # two extra HBM passes; a ragged-tail second pallas_call would avoid them.
        lanes = 128
        pad = (-n) % lanes
        flat = jnp.pad(x.reshape(-1), (0, pad))
    else:
        pad = 0
        flat = x.reshape(-1)

    rows = flat.shape[0] // lanes
    x2d = flat.reshape(rows, lanes)

    # ~4 MiB input tiles: per grid step DMA (in+out) >> 0.35 µs step overhead,
    # so we sit near the HBM roofline. Double-buffered footprint is
    # 2 bufs x (in + out) x tile = 4 x tile ≈ 16 MiB — fits every chip once we
    # raise the scoped-VMEM limit explicitly (v5e default is only 16 MiB).
    target_bytes = 4 * _MiB
    tile_rows = min(rows, max(16, target_bytes // (lanes * itemsize)))
    tile_rows = (tile_rows // 16) * 16            # keep bf16 sublane tiling legal
    if tile_rows < 16 or rows <= tile_rows:
        tile_rows = rows                           # single block == full array dims
    num_blocks = pl.cdiv(rows, tile_rows)

    tile_bytes = tile_rows * lanes * itemsize
    vmem_limit = int(min(48 * _MiB, 4 * tile_bytes + 8 * _MiB))

    out2d = pl.pallas_call(
        _wa_kernel,
        out_shape=jax.ShapeDtypeStruct((rows, lanes), dtype),
        grid_spec=pltpu.PrefetchScalarGridSpec(
            num_scalar_prefetch=1,          # weight lands in SMEM before the grid runs
            grid=(num_blocks,),
            in_specs=[pl.BlockSpec((tile_rows, lanes), lambda i, w: (i, 0))],
            out_specs=pl.BlockSpec((tile_rows, lanes), lambda i, w: (i, 0)),
        ),
        compiler_params=pltpu.CompilerParams(
            # TODO(synk): if xprof shows single-TC execution on v7x, switch this
            # axis to pltpu.CORE_PARALLEL to shard the mem-bound stream across
            # both TensorCores (no-op on v5e/v6e).
            dimension_semantics=(pltpu.PARALLEL,),
            vmem_limit_bytes=vmem_limit,
        ),
        cost_estimate=pl.CostEstimate(
            flops=6 * n,                     # abs, min, sub, mul, sub, add per elem
            transcendentals=3 * n,           # sin, exp, log1p per elem
            bytes_accessed=2 * n * itemsize,
        ),
    )(weight.reshape(-1).astype(jnp.float32), x2d)

    if pad:
        return out2d.reshape(-1)[:n].reshape(orig_shape)
    return out2d.reshape(orig_shape)


if __name__ == "__main__":
    key = jax.random.PRNGKey(0)
    x = jax.random.normal(key, (2, 4, 16, 16), dtype=jnp.float32)  # NCHW
    weight = jnp.array([0.5], dtype=jnp.float32)  # nn.Parameter init value

    out = wa_forward(x, weight)
    jax.block_until_ready(out)

    # Reference check in plain JAX
    logsig = jnp.minimum(x, 0.0) - jnp.log1p(jnp.exp(-jnp.abs(x)))
    ref = weight[0] * jnp.sin(x) + (1.0 - weight[0]) * logsig
    assert out.shape == x.shape and out.dtype == x.dtype
    assert jnp.allclose(out, ref, atol=1e-6), "mismatch vs reference"

    print("KERNEL_OK")
</pallas_src>

<mosaic_0001>
module attributes {stable_mosaic.version = 11 : i64} {
  func.func @_wa_kernel(%arg0: i32, %arg1: memref<1xf32, #tpu.memory_space<smem>>, %arg2: memref<2x1024xf32, #tpu.memory_space<vmem>>, %arg3: memref<2x1024xf32, #tpu.memory_space<vmem>>) attributes {dimension_semantics = [#tpu.dimension_semantics<parallel>], iteration_bounds = array<i64: 1>, scalar_prefetch = 1 : i64, scratch_operands = 0 : i64, tpu.core_type = #tpu.core_type<tc>, window_params = [{transform_indices = @transform_0, window_bounds = array<i64: 2, 1024>}, {transform_indices = @transform_1, window_bounds = array<i64: 2, 1024>}]} {
    %c0 = arith.constant 0 : index
    %0 = memref.load %arg1[%c0] : memref<1xf32, #tpu.memory_space<smem>>
    %c0_0 = arith.constant 0 : index
    %c0_1 = arith.constant 0 : index
    %1 = vector.load %arg2[%c0_0, %c0_1] : memref<2x1024xf32, #tpu.memory_space<vmem>>, vector<2x1024xf32>
    %2 = math.sin %1 : vector<2x1024xf32>
    %cst = arith.constant 0.000000e+00 : f32
    %3 = vector.broadcast %cst : f32 to vector<2x1024xf32>
    %4 = arith.minimumf %1, %3 : vector<2x1024xf32>
    %5 = math.absf %1 : vector<2x1024xf32>
    %cst_2 = arith.constant 0.000000e+00 : f32
    %6 = vector.broadcast %cst_2 : f32 to vector<2x1024xf32>
    %7 = arith.subf %6, %5 : vector<2x1024xf32>
    %8 = math.exp %7 : vector<2x1024xf32>
    %9 = math.log1p %8 : vector<2x1024xf32>
    %10 = arith.subf %4, %9 : vector<2x1024xf32>
    %11 = arith.subf %2, %10 : vector<2x1024xf32>
    %12 = vector.broadcast %0 : f32 to vector<2x1024xf32>
    %13 = arith.mulf %12, %11 : vector<2x1024xf32>
    %14 = arith.addf %10, %13 : vector<2x1024xf32>
    %c0_3 = arith.constant 0 : index
    %c0_4 = arith.constant 0 : index
    %15 = vector.load %arg3[%c0_3, %c0_4] : memref<2x1024xf32, #tpu.memory_space<vmem>>, vector<2x1024xf32>
    tpu.vector_store %arg3[%c0_3, %c0_4], %14 {strides = array<i32>} : memref<2x1024xf32, #tpu.memory_space<vmem>>, vector<2x1024xf32>,
    return
  }
  func.func @transform_0(%arg0: i32, %arg1: memref<1xf32, #tpu.memory_space<smem>>) -> (i32, i32) {
    %c0_i32 = arith.constant 0 : i32
    %c0_i32_0 = arith.constant 0 : i32
    return %arg0, %c0_i32 : i32, i32
  }
  func.func @transform_1(%arg0: i32, %arg1: memref<1xf32, #tpu.memory_space<smem>>) -> (i32, i32) {
    %c0_i32 = arith.constant 0 : i32
    %c0_i32_0 = arith.constant 0 : i32
    return %arg0, %c0_i32 : i32, i32
  }
}

</mosaic_0001>

<bundles_post_ra>
// kernel: tpu_custom_call.1
= control target key start
LH: loop header
LB: loop body
LE: loop exit
PB: predicated region body
PF: predicated region fallthrough
CT: control target
= control target key end

     0   :  { %8 = vsyncpa [#allocation5], 0  ;;  %s483_s0 = inlined_call_operand.<no memory space> [shape: f32[1], index: 0, kind: input, shape index: {}]   ;;  %s484_s1 = inlined_call_operand.hbm [shape: f32[2,1024], index: 1, kind: input, shape index: {}]   ;;  %s485_s2 = inlined_call_operand.hbm [shape: f32[2,1024], index: 2, kind: output, shape index: {}]  }
   0x1   :  { %9 = vsyncpa [#allocation6], 0  ;;  %s372_s9 = smov [#allocation4]  }
   0x2   :  { %s16_s10 = sshll.u32 %s372_s9, 4  ;;  %s17_s10 = int_to_ptr.vmem [resolvable:$true] %s16_s10 }
   0x3   :  { %s336_s11 = scalar_lea.vmem %s17_s10, 256  ;;  %p341_p1 = scmp.lt.s32.totalorder %s17_s10, %s17_s10 }
   0x4   :  { %p337_p0 = scmp.ne.s32.totalorder %s17_s10, %s336_s11  ;;  %p342_p2 = scmp.lt.s32.totalorder %s336_s11, %s336_s11 }
   0x6   :  { %p343_p3 = por %p342_p2, %p341_p1 }
   0x8   :  { %p344_p4 = pnand %p343_p3, %p337_p0 }
   0xa   :  { %347 = shalt.err (!%p344_p4)
}
   0xb   :  { %19 = dma.hbm_to_vmem [thread:$0]  %s484_s1, 256, %s17_s10, [#allocation5]  }
   0xc   :  { %368 = dma.done.wait [#allocation5], 256  }
   0xd   :  { %369 = vsyncadd [#allocation5], 4294967040  ;;  %v398_v0 = vld [vmem:[#allocation4] sm:$0xff]  ;;  %v400_v1 = vld [vmem:[#allocation4 + $0x8] sm:$0xff]  ;;  %v373_v19 = vmov 683565275  }
   0xe   :  { %v29_v2 = vand.u32 2139095040, %v398_v0  ;;  %v404_v3 = vand.u32 2147483647, %v398_v0  ;;  %v133_v4 = vand.u32 2139095040, %v400_v1  ;;  %v409_v14 = vand.u32 2147483647, %v400_v1 }
   0xf   :  { %v374_v21 = vmov 2475754826   ;;  %v375_v23 = vmov 2131351028   ;;  %v376_v25 = vmov 2102212464  }
  0x10   :  { %v30_v5 = vshrl.u32 %v29_v2, 23  ;;  %v134_v6 = vshrl.u32 %v133_v4, 23  ;;  %v33_v8 = vand.u32 8388607, %v404_v3  ;;  %v377_v27 = vmov 920167782  }
  0x11   :  { %v137_v30 = vand.u32 8388607, %v409_v14  ;;  %v378_v36 = vmov 1326507024   ;;  %v238_v2 = vsub.f32 0.0, %v404_v3  ;;  %vm28_vm14 = vcmp.lt.s32.totalorder %v398_v0, 0 }
  0x12   :  { %v288_v7 = vadd.s32 4294967169, %v30_v5  ;;  %v292_v9 = vadd.s32 4294967169, %v134_v6  ;;  %v34_v12 = vor.u32 8388608, %v33_v8  ;;  %vm27_vm15 = vcmp.le.f32.partialorder %v404_v3, 0.7853982 }
  0x13   :  { %v138_v54 = vor.u32 8388608, %v137_v30 }
  0x14   :  { %v36_v10 = vadd.s32 1, %v288_v7  ;;  %v140_v11 = vadd.s32 1, %v292_v9  ;;  %v411_v29 = vshll.u32 %v34_v12, 8 }
  0x16   :  { %vm37_vm0 = vcmp.gt.s32.totalorder %v36_v10, 0  ;;  %vm141_vm1 = vcmp.gt.s32.totalorder %v140_v11, 0 }
  0x17   :  { %v38_v13 = vsel %vm37_vm0, %v36_v10, 0  ;;  %v142_v17 = vsel %vm141_vm1, %v140_v11, 0  ;;  %vm132_vm0 = vcmp.lt.s32.totalorder %v400_v1, 0  ;;  %vm131_vm1 = vcmp.le.f32.partialorder %v409_v14, 0.7853982 }
  0x18   :  { %v40_v15 = vand.u32 31, %v38_v13  ;;  %v39_v16 = vshrl.u32 %v38_v13, 5  ;;  %v144_v38 = vand.u32 31, %v142_v17  ;;  %v143_v4 = vshrl.u32 %v142_v17, 5 }
  0x19   :  { %v178_v13 = vshll.u32 %v138_v54, 8 }
  0x1a   :  { %v41_v18 = vsub.s32 32, %v40_v15  ;;  %v43_v20 = vshll.u32 %v373_v19, %v40_v15  ;;  %v46_v22 = vshll.u32 %v374_v21, %v40_v15  ;;  %v49_v24 = vshll.u32 %v375_v23, %v40_v15 }
  0x1b   :  { %v52_v26 = vshll.u32 %v376_v25, %v40_v15  ;;  %v55_v28 = vshll.u32 %v377_v27, %v40_v15  ;;  %vm58_vm2 = vcmp.lt.s32.totalorder %v39_v16, 1  ;;  %vm61_vm3 = vcmp.lt.s32.totalorder %v39_v16, 4 }
  0x1c   :  { %v42_v31 = vshrl.u32 %v373_v19, %v41_v18  ;;  %v44_v32 = vshrl.u32 %v374_v21, %v41_v18  ;;  %v47_v33 = vshrl.u32 %v375_v23, %v41_v18  ;;  %v50_v34 = vshrl.u32 %v376_v25, %v41_v18 }
  0x1d   :  { %v53_v35 = vshrl.u32 %v377_v27, %v41_v18  ;;  %v56_v37 = vshrl.u32 %v378_v36, %v41_v18  ;;  %vm59_vm4 = vcmp.lt.s32.totalorder %v39_v16, 2  ;;  %vm60_vm5 = vcmp.lt.s32.totalorder %v39_v16, 3 }
  0x1e   :  { %v45_v39 = vor.u32 %v44_v32, %v43_v20  ;;  %v48_v40 = vor.u32 %v47_v33, %v46_v22  ;;  %v51_v41 = vor.u32 %v50_v34, %v49_v24  ;;  %v145_v51 = vsub.s32 32, %v144_v38 }
  0x1f   :  { %v54_v42 = vor.u32 %v53_v35, %v52_v26  ;;  %v57_v43 = vor.u32 %v56_v37, %v55_v28  ;;  %v147_v55 = vshll.u32 %v373_v19, %v144_v38  ;;  %v150_v59 = vshll.u32 %v374_v21, %v144_v38 }
  0x20   :  { %v62_v44 = vsel %vm58_vm2, %v42_v31, %v45_v39  ;;  %v63_v45 = vsel %vm61_vm3, %v51_v41, 2102212464  ;;  %v66_v46 = vsel %vm58_vm2, %v45_v39, %v48_v40  ;;  %v70_v47 = vsel %vm58_vm2, %v48_v40, %v51_v41 }
  0x21   :  { %v64_v48 = vsel %vm60_vm5, %v48_v40, %v63_v45  ;;  %v67_v49 = vsel %vm61_vm3, %v54_v42, 920167782  ;;  %v71_v50 = vsel %vm61_vm3, %v57_v43, 1326507024  ;;  %v148_v5 = vshrl.u32 %v374_v21, %v145_v51 }
  0x22   :  { %v68_v52 = vsel %vm60_vm5, %v51_v41, %v67_v49  ;;  %v72_v53 = vsel %vm60_vm5, %v54_v42, %v71_v50  ;;  %v65_v56 = vsel %vm59_vm4, %v62_v44, %v64_v48  ;;  %v151_v6 = vshrl.u32 %v375_v23, %v145_v51 }
  0x23   :  { %v69_v57 = vsel %vm59_vm4, %v66_v46, %v68_v52  ;;  %v73_v58 = vsel %vm59_vm4, %v70_v47, %v72_v53  ;;  %v153_v7 = vshll.u32 %v375_v23, %v144_v38  ;;  %v154_v8 = vshrl.u32 %v376_v25, %v145_v51 }
  0x24   :  { %v418_v60 = vmul.u32.u64.low %v411_v29, %v73_v58  ;;  %v419_v61 = vmul.u32.u64.high %v411_v29, %v73_v58, %v418_v60  ;;  %v422_v62 = vmul.u32.u64.low %v411_v29, %v69_v57  ;;  %v423_v63 = vmul.u32.u64.high %v411_v29, %v69_v57, %v422_v62 }
  0x25   :  { %v156_v9 = vshll.u32 %v376_v25, %v144_v38  ;;  %v81_v10 = vmul.u32 %v411_v29, %v65_v56  ;;  %v146_v11 = vshrl.u32 %v373_v19, %v145_v51  ;;  %v157_v12 = vshrl.u32 %v377_v27, %v145_v51 }
  0x26   :  { %vm83_vm6 = vc.u32 %v419_v61, %v422_v62  ;;  %v84_v15 = vadd.s32 1, %v423_v63  ;;  %v149_v16 = vor.u32 %v148_v5, %v147_v55  ;;  %v152_v18 = vor.u32 %v151_v6, %v150_v59 }
  0x27   :  { %v155_v20 = vor.u32 %v154_v8, %v153_v7  ;;  %v158_v22 = vor.u32 %v157_v12, %v156_v9  ;;  %v159_v17 = vshll.u32 %v377_v27, %v144_v38  ;;  %v160_v21 = vshrl.u32 %v378_v36, %v145_v51 }
  0x28   :  { %v85_v23 = vsel %vm83_vm6, %v84_v15, %v423_v63  ;;  %vm162_vm7 = vcmp.lt.s32.totalorder %v143_v4, 1  ;;  %vm163_vm8 = vcmp.lt.s32.totalorder %v143_v4, 2  ;;  %vm164_vm9 = vcmp.lt.s32.totalorder %v143_v4, 3 }
  0x29   :  { %v86_v24 = vadd.s32 %v85_v23, %v81_v10  ;;  %v161_v19 = vor.u32 %v160_v21, %v159_v17  ;;  %vm165_vm10 = vcmp.lt.s32.totalorder %v143_v4, 4  ;;  %v166_v25 = vsel %vm162_vm7, %v146_v11, %v149_v16 }
  0x2a   :  { %v167_v26 = vsel %vm165_vm10, %v155_v20, 2102212464  ;;  %v170_v28 = vsel %vm162_vm7, %v149_v16, %v152_v18  ;;  %v171_v29 = vsel %vm165_vm10, %v158_v22, 920167782  ;;  %v174_v30 = vsel %vm162_vm7, %v152_v18, %v155_v20 }
  0x2b   :  { %v87_v31 = vadd.s32 536870912, %v86_v24  ;;  %v168_v32 = vsel %vm164_vm9, %v152_v18, %v167_v26  ;;  %v172_v33 = vsel %vm164_vm9, %v155_v20, %v171_v29  ;;  %v175_v34 = vsel %vm165_vm10, %v161_v19, 1326507024 }
  0x2c   :  { %v169_v27 = vsel %vm163_vm8, %v166_v25, %v168_v32  ;;  %v173_v35 = vsel %vm163_vm8, %v170_v28, %v172_v33  ;;  %v176_v36 = vsel %vm164_vm9, %v158_v22, %v175_v34  ;;  %v240_v41 = vmul.f32 1.442695, %v238_v2 }
  0x2d   :  { %v88_v37 = vshrl.u32 %v87_v31, 30  ;;  %v177_v38 = vsel %vm163_vm8, %v174_v30, %v176_v36  ;;  %v435_v39 = vmul.u32.u64.low %v178_v13, %v173_v35  ;;  %v436_v40 = vmul.u32.u64.high %v178_v13, %v173_v35, %v435_v39 }
  0x2e   :  { %v438_v42 = vmul.u32.u64.low %v178_v13, %v177_v38  ;;  %v439_v43 = vmul.u32.u64.high %v178_v13, %v177_v38, %v438_v42  ;;  %v185_v45 = vmul.u32 %v178_v13, %v169_v27  ;;  %312 = vpow2.f32 %v240_v41 }
  0x2f   :  { %v89_v44 = vshll.u32 %v88_v37, 30  ;;  %v188_v47 = vadd.s32 1, %v436_v40  ;;  %v239_v52 = vsub.f32 0.0, %v409_v14  ;;  %v82_v59 = vadd.s32 %v422_v62, %v419_v61 }
  0x30   :  { %vm187_vm11 = vc.u32 %v439_v43, %v435_v39  ;;  %v186_v62 = vadd.s32 %v435_v39, %v439_v43  ;;  %v112_v21 = vsub.s32 4, %v88_v37  ;;  %vm118_vm5 = vweird.f32 %v398_v0 }
  0x31   :  { %v90_v46 = vsub.s32 %v86_v24, %v89_v44  ;;  %v189_v49 = vsel %vm187_vm11, %v188_v47, %v436_v40  ;;  %v242_v57 = vmul.f32 1.442695, %v239_v52  ;;  %v266_v14 = vstv %s483_s0  ;;  %s379_s0 = smov [#allocation7]  }
  0x32   :  { %v190_v50 = vadd.s32 %v189_v49, %v185_v45  ;;  %v113_v31 = vsel %vm28_vm14, %v112_v21, %v88_v37  ;;  %vm222_vm11 = vweird.f32 %v400_v1  ;;  %s279_s15 = sshll.u32 %s379_s0, 4  ;;  %s280_s15 = int_to_ptr.vmem [resolvable:$true] %s279_s15 }
  0x33   :  { %v92_v48 = vsub.s32 0, %v90_v46  ;;  %314 = vpow2.f32 %v242_v57  ;;  %v115_v39 = vsel %vm27_vm15, 0, %v113_v31  ;;  %s348_s16 = scalar_lea.vmem %s280_s15, 256  ;;  %p353_p6 = scmp.lt.s32.totalorder %s280_s15, %s280_s15 }
  0x34   :  { %v191_v53 = vadd.s32 536870912, %v190_v50  ;;  %v119_v41 = vadd.s32 3, %v115_v39  ;;  %p349_p5 = scmp.ne.s32.totalorder %s280_s15, %s348_s16  ;;  %p354_p7 = scmp.lt.s32.totalorder %s348_s16, %s348_s16 }
  0x35   :  { %v289_v51 = vmin.u32 %v92_v48, %v90_v46 }
  0x36   :  { %v445_v55 = vshrl.u32 %v191_v53, 30  ;;  %v120_v47 = vand.u32 3, %v119_v41  ;;  %v234_v53 = vmin.f32 %v398_v0, 0.0  ;;  %p355_p8 = por %p354_p7, %p353_p6 }
  0x37   :  { %v94_v54 = vclz %v289_v51 }
  0x38   :  { %v193_v58 = vshll.u32 %v445_v55, 30  ;;  %v216_v45 = vsub.s32 4, %v445_v55  ;;  %vm125_vm3 = vcmp.eq.s32.totalorder %v120_v47, 2  ;;  %vm122_vm4 = vcmp.eq.s32.totalorder %v120_v47, 0  ;;  %p356_p9 = pnand %p355_p8, %p349_p5 }
  0x39   :  { %v290_v56 = vadd.s32 4294967294, %v94_v54  ;;  %vm121_vm6 = vcmp.lt.s32.totalorder %v120_v47, 2 }
  0x3a   :  { %v194_v63 = vsub.s32 %v190_v50, %v193_v58  ;;  %v217_v51 = vsel %vm132_vm0, %v216_v45, %v445_v55 }
  0x3b   :  { %vm291_vm12 = vcmp.lt.s32.totalorder %v290_v56, 0  ;;  %v313_v7 = vpop.eup %312  ;;  %v219_v58 = vsel %vm131_vm1, 0, %v217_v51 }
  0x3c   :  { %v97_v60 = vsel %vm291_vm12, 0, %v290_v56  ;;  %v196_v6 = vsub.s32 0, %v194_v63  ;;  %v244_v13 = vadd.f32 1.0, %v313_v7  ;;  %v247_v35 = vmul.f32 -0.5, %v313_v7 }
  0x3d   :  { %v98_v2 = vsub.s32 32, %v97_v60  ;;  %v99_v4 = vshll.u32 %v90_v46, %v97_v60  ;;  %v102_v5 = vsub.s32 4294967266, %v97_v60  ;;  %v250_v44 = vand.u32 2147483647, %v313_v7 }
  0x3e   :  { %v293_v10 = vmin.u32 %v196_v6, %v194_v63  ;;  %316 = vlog2.f32 %v244_v13  ;;  %v248_v42 = vadd.f32 1.0, %v247_v35 }
  0x3f   :  { %v100_v8 = vshrl.u32 %v82_v59, %v98_v2  ;;  %v103_v9 = vadd.s32 127, %v102_v5  ;;  %vm461_vm2 = vcmp.lt.f32.partialorder %v250_v44, 0.0004427343 }
  0x40   :  { %v198_v15 = vclz %v293_v10  ;;  %v315_v26 = vpop.eup %314  ;;  %v249_v49 = vmul.f32 %v313_v7, %v248_v42 }
  0x41   :  { %v101_v11 = vor.u32 %v100_v8, %v99_v4  ;;  %v104_v12 = vshll.u32 %v103_v9, 23  ;;  %v253_v27 = vadd.f32 1.0, %v315_v26  ;;  %v256_v54 = vmul.f32 -0.5, %v315_v26 }
  0x42   :  { %v294_v20 = vadd.s32 4294967294, %v198_v15  ;;  %v223_v4 = vadd.s32 3, %v219_v58  ;;  %v259_v8 = vand.u32 2147483647, %v315_v26 }
  0x43   :  { %v105_v16 = vor.u32 4788187, %v104_v12  ;;  %v108_v18 = vcvt.s32.f32 %v101_v11  ;;  %v257_v5 = vadd.f32 1.0, %v256_v54 }
  0x44   :  { %vm295_vm13 = vcmp.lt.s32.totalorder %v294_v20, 0  ;;  %v224_v12 = vand.u32 3, %v223_v4  ;;  %vm260_vm7 = vcmp.lt.f32.partialorder %v259_v8, 0.0004427343 }
  0x45   :  { %v106_v61 = vand.u32 2147483647, %v105_v16  ;;  %v201_v17 = vsel %vm295_vm13, 0, %v294_v20  ;;  %v258_v15 = vmul.f32 %v315_v26, %v257_v5  ;;  %v235_v16 = vmin.f32 %v400_v1, 0.0 }
  0x46   :  { %v202_v23 = vsub.s32 32, %v201_v17  ;;  %v203_v24 = vshll.u32 %v194_v63, %v201_v17  ;;  %v206_v19 = vsub.s32 4294967266, %v201_v17  ;;  %vm229_vm8 = vcmp.eq.s32.totalorder %v224_v12, 2 }
  0x47   :  { %v109_v22 = vmul.f32 %v108_v18, %v106_v61  ;;  %vm226_vm9 = vcmp.eq.s32.totalorder %v224_v12, 0  ;;  %vm225_vm10 = vcmp.lt.s32.totalorder %v224_v12, 2 }
  0x48   :  { %v204_v28 = vshrl.u32 %v186_v62, %v202_v23  ;;  %v207_v29 = vadd.s32 127, %v206_v19 }
  0x49   :  { %v110_v25 = vxor.u32 2147483648, %v109_v22 }
  0x4a   :  { %v205_v33 = vor.u32 %v204_v28, %v203_v24  ;;  %v208_v34 = vshll.u32 %v207_v29, 23 }
  0x4b   :  { %v111_v30 = vsel %vm28_vm14, %v110_v25, %v109_v22  ;;  %v317_v43 = vpop.eup %316 }
  0x4c   :  { %v114_v32 = vsel %vm27_vm15, %v398_v0, %v111_v30  ;;  %v209_v36 = vor.u32 4788187, %v208_v34  ;;  %v212_v38 = vcvt.s32.f32 %v205_v33  ;;  %v246_v48 = vmul.f32 0.6931472, %v317_v43 }
  0x4d   :  { %318 = vcosq.f32 %v114_v32 }
  0x4e   :  { %320 = vsinq.f32 %v114_v32  ;;  %v210_v40 = vand.u32 2147483647, %v209_v36  ;;  %v252_v57 = vsel %vm461_vm2, %v249_v49, %v246_v48 }
  0x4f   :  { %322 = vlog2.f32 %v253_v27  ;;  %v262_v2 = vsub.f32 %v234_v53, %v252_v57 }
  0x50   :  { %v213_v37 = vmul.f32 %v212_v38, %v210_v40 }
  0x52   :  { %v214_v46 = vxor.u32 2147483648, %v213_v37 }
  0x54   :  { %v215_v50 = vsel %vm132_vm0, %v214_v46, %v213_v37 }
  0x55   :  { %v218_v52 = vsel %vm131_vm1, %v400_v1, %v215_v50 }
  0x56   :  { %324 = vcosq.f32 %v218_v52 }
  0x57   :  { %326 = vsinq.f32 %v218_v52 }
  0x5a   :  { %v319_v56 = vpop.eup %318 }
  0x5b   :  { %v321_v59 = vpop.eup %320  ;;  %v126_v55 = vxor.u32 2147483648, %v319_v56 }
  0x5c   :  { %v123_v60 = vxor.u32 2147483648, %v321_v59  ;;  %v323_v6 = vpop.eup %322 }
  0x5d   :  { %v127_v63 = vsel %vm125_vm3, %v126_v55, %v321_v59  ;;  %v255_v13 = vmul.f32 0.6931472, %v323_v6 }
  0x5e   :  { %v124_v7 = vsel %vm122_vm4, %v319_v56, %v123_v60 }
  0x5f   :  { %v128_v9 = vsel %vm121_vm6, %v124_v7, %v127_v63  ;;  %v261_v61 = vsel %vm260_vm7, %v258_v15, %v255_v13 }
  0x60   :  { %v129_v10 = vsel %vm118_vm5, nan, %v128_v9  ;;  %v263_v23 = vsub.f32 %v235_v16, %v261_v61 }
  0x61   :  { %v264_v11 = vsub.f32 %v129_v10, %v262_v2 }
  0x63   :  { %v267_v0 = vmul.f32 %v266_v14, %v264_v11  ;;  %v325_v18 = vpop.eup %324 }
  0x64   :  { %v327_v62 = vpop.eup %326  ;;  %v230_v22 = vxor.u32 2147483648, %v325_v18 }
  0x65   :  { %v269_v20 = vadd.f32 %v267_v0, %v262_v2  ;;  %v227_v17 = vxor.u32 2147483648, %v327_v62 }
  0x66   :  { %v231_v21 = vsel %vm229_vm8, %v230_v22, %v327_v62 }
  0x67   :  { %271 = vst [vmem:[#allocation7] sm:$0xff] %v269_v20  ;;  %v228_v24 = vsel %vm226_vm9, %v325_v18, %v227_v17 }
  0x68   :  { %v232_v19 = vsel %vm225_vm10, %v228_v24, %v231_v21 }
  0x69   :  { %v233_v25 = vsel %vm222_vm11, nan, %v232_v19 }
  0x6a   :  { %v265_v26 = vsub.f32 %v233_v25, %v263_v23 }
  0x6c   :  { %v268_v28 = vmul.f32 %v266_v14, %v265_v26 }
  0x6e   :  { %v270_v29 = vadd.f32 %v268_v28, %v263_v23 }
  0x70   :  { %272 = vst [vmem:[#allocation7 + $0x8] sm:$0xff] %v270_v29 }
  0x71   :  { %359 = shalt.err (!%p356_p9)
}
  0x72   :  { %282 = dma.vmem_to_hbm [thread:$0]  %s280_s15, 256, %s485_s2, [#allocation6]  }
  0x73   :  { %370 = dma.done.wait [#allocation6], 256  }
  0x74   :  { %371 = vsyncadd [#allocation6], 4294967040 }
  0x75   :  { %286 = vsyncpa [#allocation5], 1 }
  0x76   :  { %287 = vsyncpa [#allocation6], 1 }

</bundles_post_ra>
